<compile_context>
chip_gen: v5e
topology: v5e:2x2
jax: 0.10.0
libtpu: 0.0.40
codegen_flags: <defaults>
</compile_context>

<pallas_src>
import functools

import jax
import jax.numpy as jnp
from jax.experimental import pallas as pl
from jax.experimental.pallas import tpu as pltpu


def _round_up(x: int, m: int) -> int:
    return ((x + m - 1) // m) * m


@functools.lru_cache(maxsize=1)
def _vmem_budget_and_limit():
    """Per-chip VMEM working-set budget and scoped-VMEM limit (bytes)."""
    cap = None
    try:
        info = pltpu.get_tpu_info()
        cap = int(getattr(info, "vmem_capacity_bytes", 0) or 0) or None
    except Exception:
        cap = None
    if cap is None:
        cap = 64 * 1024 * 1024  # conservative (v7x-sized) fallback
    # Leave roughly half of physical VMEM for the compiler / pipeline internals.
    budget = max(16 << 20, min(cap // 2 - (4 << 20), 96 << 20))
    limit = max(32 << 20, min(cap - (8 << 20), budget + (16 << 20)))
    return int(budget), int(limit)


def _aligned_divisors(dim_pad: int, cap: int):
    """Multiples of 128 that divide dim_pad (itself a 128-multiple), <= cap, descending."""
    q = dim_pad // 128
    out = []
    for d in range(q, 0, -1):
        if q % d == 0 and 128 * d <= cap:
            out.append(128 * d)
    if not out:
        out = [128]
    return out


@functools.lru_cache(maxsize=None)
def _choose_tiles(batch, k_pad, n_pad, isz_in, isz_w, isz_out, budget, want_two_cores):
    """Pick (tm, tn, tk, m_pad). Priority: full-K tile, then largest N tile that fits."""
    tm = min(_round_up(batch, 8), 512)
    m_pad = _round_up(batch, tm)
    grid_m = m_pad // tm

    n_cands = _aligned_divisors(n_pad, 1024)
    if want_two_cores and grid_m == 1 and n_pad >= 256:
        # Guarantee >= 2 blocks on a parallel axis so both v7x TensorCores get work.
        split = [t for t in n_cands if n_pad // t >= 2]
        if split:
            n_cands = split
    k_cands = _aligned_divisors(k_pad, k_pad)  # tk == k_pad tried first

    def working_set(tm_, tn_, tk_):
        use_scratch = (k_pad // tk_) > 1 and isz_out != 4
        ws = 2 * (tm_ * tk_ * isz_in + tk_ * tn_ * isz_w + tn_ * 4) + 2 * tm_ * tn_ * isz_out
        if use_scratch:
            ws += tm_ * tn_ * 4
        return ws

    for tk in k_cands:
        for tn in n_cands:
            if working_set(tm, tn, tk) <= budget:
                return tm, tn, tk, m_pad
    # Minimal legal tiles (tiny problems always fit; pathological ones stay correct).
    return tm, n_cands[-1], k_cands[-1], m_pad


# ----------------------------- kernels ------------------------------------- #

def _linear_kernel_single(x_ref, w_ref, b_ref, o_ref):
    """Whole K in one block: one MXU pass, bias added in f32, single store."""
    acc = jnp.dot(x_ref[...], w_ref[...], preferred_element_type=jnp.float32)
    o_ref[...] = (acc + b_ref[...].astype(jnp.float32)).astype(o_ref.dtype)


def _linear_kernel_ksplit_f32(x_ref, w_ref, b_ref, o_ref):
    """K split across the grid, f32 output: accumulate directly in the VMEM-resident
    output block (its (i, j) block index is constant across k) — no scratch."""
    @pl.when(pl.program_id(2) == 0)
    def _init():
        o_ref[...] = jnp.broadcast_to(b_ref[...].astype(jnp.float32), o_ref.shape)

    o_ref[...] += jnp.dot(x_ref[...], w_ref[...], preferred_element_type=jnp.float32)


def _linear_kernel_ksplit_acc(x_ref, w_ref, b_ref, o_ref, acc_ref):
    """K split, narrow output dtype: f32 scratch accumulator, cast once in epilogue."""
    k = pl.program_id(2)

    @pl.when(k == 0)
    def _init():
        acc_ref[...] = jnp.broadcast_to(b_ref[...].astype(jnp.float32), acc_ref.shape)

    acc_ref[...] += jnp.dot(x_ref[...], w_ref[...], preferred_element_type=jnp.float32)

    @pl.when(k == pl.num_programs(2) - 1)
    def _fin():
        o_ref[...] = acc_ref[...].astype(o_ref.dtype)


# ----------------------------- wrapper -------------------------------------- #

def prepare_linear_params(w, b, *, compute_dtype=None):
    """Transpose / pad / (optionally) cast the nn.Linear weights ONCE.

    Do this at model-build time: the cost is amortized to zero over forward calls,
    so the per-call path never re-copies W in HBM.

    w: [output_dim, input_dim] (PyTorch layout), b: [output_dim].
    compute_dtype: e.g. jnp.bfloat16 to halve W HBM traffic / double MXU rate
      when model precision allows (default: keep w's dtype → exact f32 semantics).
    """
    w = jnp.asarray(w)
    b = jnp.asarray(b)
    output_dim, input_dim = w.shape
    k_pad = _round_up(input_dim, 128)
    n_pad = _round_up(output_dim, 128)

    wt = w.T  # [K, N] — what the MXU wants; no in-kernel transpose.
    if compute_dtype is not None:
        wt = wt.astype(compute_dtype)
    if (k_pad, n_pad) != (input_dim, output_dim):
        wt = jnp.pad(wt, ((0, k_pad - input_dim), (0, n_pad - output_dim)))

    b_row = b.astype(jnp.float32)
    if n_pad != output_dim:
        b_row = jnp.pad(b_row, (0, n_pad - output_dim))
    b_row = b_row.reshape(1, n_pad)

    return {
        "w_kn": jax.device_put(wt),
        "b_row": jax.device_put(b_row),
        "input_dim": int(input_dim),
        "output_dim": int(output_dim),
    }


@functools.partial(
    jax.jit,
    static_argnames=("out_dim", "tm", "tn", "tk", "m_pad", "vmem_limit", "out_dtype"),
)
def _linear_forward_impl(x, w_kn, b_row, *, out_dim, tm, tn, tk, m_pad, vmem_limit, out_dtype):
    batch, in_dim = x.shape
    k_pad, n_pad = w_kn.shape

    # Feed the MXU the weight's compute dtype (bf16 path) if it differs.
    if x.dtype != w_kn.dtype:
        x = x.astype(w_kn.dtype)

    # Pad X only when actually needed (K to match pre-padded W, M to the tile).
    pad_m = m_pad - batch
    pad_k = k_pad - in_dim
    if pad_m or pad_k:
        x = jnp.pad(x, ((0, pad_m), (0, pad_k)))

    grid_m = m_pad // tm
    grid_n = n_pad // tn
    grid_k = k_pad // tk

    x_bytes = x.size * x.dtype.itemsize
    w_bytes = w_kn.size * w_kn.dtype.itemsize
    o_bytes = m_pad * n_pad * jnp.dtype(out_dtype).itemsize
    cost = pl.CostEstimate(
        flops=2 * m_pad * n_pad * k_pad,
        transcendentals=0,
        # Real HBM traffic: X re-streamed once per N block, W once per M block.
        bytes_accessed=x_bytes * grid_n + (w_bytes + b_row.size * 4) * grid_m + o_bytes,
    )
    out_shape = jax.ShapeDtypeStruct((m_pad, n_pad), out_dtype)

    # TODO(synk): if xprof shows exposed DMA on the W stream, add
    # pipeline_mode=pl.Buffered(3) to the W BlockSpec (VMEM budget permitting).
    if grid_k == 1:
        # Single K pass: no accumulator, no init/finalize branches.
        out_padded = pl.pallas_call(
            _linear_kernel_single,
            out_shape=out_shape,
            grid_spec=pltpu.PrefetchScalarGridSpec(
                num_scalar_prefetch=0,
                grid=(grid_m, grid_n),
                in_specs=[
                    pl.BlockSpec((tm, tk), lambda i, j: (i, 0)),   # x tile (full K)
                    pl.BlockSpec((tk, tn), lambda i, j: (0, j)),   # W tile [K, N]
                    pl.BlockSpec((1, tn), lambda i, j: (0, j)),    # bias tile
                ],
                out_specs=pl.BlockSpec((tm, tn), lambda i, j: (i, j)),
            ),
            compiler_params=pltpu.CompilerParams(
                dimension_semantics=("parallel", "parallel"),
                vmem_limit_bytes=vmem_limit,
            ),
            cost_estimate=cost,
        )(x, w_kn, b_row)
    else:
        in_specs = [
            pl.BlockSpec((tm, tk), lambda i, j, k: (i, k)),       # x tile
            pl.BlockSpec((tk, tn), lambda i, j, k: (k, j)),       # W tile [K, N]
            pl.BlockSpec((1, tn), lambda i, j, k: (0, j)),        # bias tile
        ]
        out_specs = pl.BlockSpec((tm, tn), lambda i, j, k: (i, j))
        cparams = pltpu.CompilerParams(
            dimension_semantics=("parallel", "parallel", "arbitrary"),
            vmem_limit_bytes=vmem_limit,
        )
        if jnp.dtype(out_dtype) == jnp.dtype(jnp.float32):
            # f32 output: accumulate directly into the VMEM-resident output block.
            out_padded = pl.pallas_call(
                _linear_kernel_ksplit_f32,
                out_shape=out_shape,
                grid_spec=pltpu.PrefetchScalarGridSpec(
                    num_scalar_prefetch=0,
                    grid=(grid_m, grid_n, grid_k),
                    in_specs=in_specs,
                    out_specs=out_specs,
                ),
                compiler_params=cparams,
                cost_estimate=cost,
            )(x, w_kn, b_row)
        else:
            out_padded = pl.pallas_call(
                _linear_kernel_ksplit_acc,
                out_shape=out_shape,
                grid_spec=pltpu.PrefetchScalarGridSpec(
                    num_scalar_prefetch=0,
                    grid=(grid_m, grid_n, grid_k),
                    in_specs=in_specs,
                    out_specs=out_specs,
                    scratch_shapes=[pltpu.VMEM((tm, tn), jnp.float32)],
                ),
                compiler_params=cparams,
                cost_estimate=cost,
            )(x, w_kn, b_row)

    if m_pad != batch or n_pad != out_dim:
        out_padded = out_padded[:batch, :out_dim]
    return out_padded


def linear_classifier_forward(x, params):
    """y = x @ W^T + b using weights prepared once by `prepare_linear_params`."""
    w_kn = params["w_kn"]
    b_row = params["b_row"]
    out_dim = params["output_dim"]

    batch = int(x.shape[0])
    k_pad, n_pad = (int(d) for d in w_kn.shape)
    out_dtype = x.dtype

    budget, vmem_limit = _vmem_budget_and_limit()
    isz_w = int(jnp.dtype(w_kn.dtype).itemsize)
    isz_out = int(jnp.dtype(out_dtype).itemsize)
    tm, tn, tk, m_pad = _choose_tiles(
        batch, k_pad, n_pad, isz_w, isz_w, isz_out, budget, True
    )

    return _linear_forward_impl(
        x, w_kn, b_row,
        out_dim=out_dim, tm=tm, tn=tn, tk=tk, m_pad=m_pad,
        vmem_limit=vmem_limit, out_dtype=out_dtype,
    )


if __name__ == "__main__":
    key = jax.random.PRNGKey(0)

    # --- Test 1: small shapes consistent with linear_classifier(input_dim, output_dim).
    batch, input_dim, output_dim = 8, 32, 16
    kx, kw, kb, key = jax.random.split(key, 4)
    bound = 1.0 / (input_dim ** 0.5)  # torch.nn.Linear init: U(-1/sqrt(fan_in), ...)
    w = jax.random.uniform(kw, (output_dim, input_dim), jnp.float32, -bound, bound)
    b = jax.random.uniform(kb, (output_dim,), jnp.float32, -bound, bound)
    x = jax.random.normal(kx, (batch, input_dim), jnp.float32)

    params = prepare_linear_params(w, b)          # transpose/pad once, outside the hot path
    y = linear_classifier_forward(x, params)
    jax.block_until_ready(y)

    y_ref = jnp.dot(x, w.T, precision=jax.lax.Precision.HIGHEST) + b
    assert y.shape == (batch, output_dim)
    assert jnp.allclose(y, y_ref, atol=1e-5, rtol=1e-5)

    # --- Test 2: non-128-multiple dims to exercise padding / slicing paths.
    batch2, in2, out2 = 5, 200, 130
    kx2, kw2, kb2, key = jax.random.split(key, 4)
    bound2 = 1.0 / (in2 ** 0.5)
    w2 = jax.random.uniform(kw2, (out2, in2), jnp.float32, -bound2, bound2)
    b2 = jax.random.uniform(kb2, (out2,), jnp.float32, -bound2, bound2)
    x2 = jax.random.normal(kx2, (batch2, in2), jnp.float32)

    params2 = prepare_linear_params(w2, b2)
    y2 = linear_classifier_forward(x2, params2)
    jax.block_until_ready(y2)

    y2_ref = jnp.dot(x2, w2.T, precision=jax.lax.Precision.HIGHEST) + b2
    assert y2.shape == (batch2, out2)
    assert jnp.allclose(y2, y2_ref, atol=1e-4, rtol=1e-4)

    print("KERNEL_OK")
</pallas_src>

<mosaic_0001>
module attributes {stable_mosaic.version = 11 : i64} {
  func.func @_linear_kernel_single(%arg0: i32, %arg1: i32, %arg2: memref<8x128xf32, #tpu.memory_space<vmem>>, %arg3: memref<128x128xf32, #tpu.memory_space<vmem>>, %arg4: memref<1x128xf32, #tpu.memory_space<vmem>>, %arg5: memref<8x128xf32, #tpu.memory_space<vmem>>) attributes {dimension_semantics = [#tpu.dimension_semantics<parallel>, #tpu.dimension_semantics<parallel>], iteration_bounds = array<i64: 1, 1>, scalar_prefetch = 0 : i64, scratch_operands = 0 : i64, tpu.core_type = #tpu.core_type<tc>, window_params = [{transform_indices = @transform_0, window_bounds = array<i64: 8, 128>}, {transform_indices = @transform_1, window_bounds = array<i64: 128, 128>}, {transform_indices = @transform_2, window_bounds = array<i64: 1, 128>}, {transform_indices = @transform_3, window_bounds = array<i64: 8, 128>}]} {
    %c0 = arith.constant 0 : index
    %c0_0 = arith.constant 0 : index
    %0 = vector.load %arg2[%c0, %c0_0] : memref<8x128xf32, #tpu.memory_space<vmem>>, vector<8x128xf32>
    %c0_1 = arith.constant 0 : index
    %c0_2 = arith.constant 0 : index
    %1 = vector.load %arg3[%c0_1, %c0_2] : memref<128x128xf32, #tpu.memory_space<vmem>>, vector<128x128xf32>
    %cst = arith.constant dense<0.000000e+00> : vector<8x128xf32>
    %2 = tpu.matmul %0, %1, %cst {dimension_numbers = #tpu.dot_dimension_numbers<[1], [0], [0], [1], [0, 0, 1, 1], [], []>} : vector<8x128xf32>, vector<128x128xf32>, vector<8x128xf32> -> vector<8x128xf32>
    %c0_3 = arith.constant 0 : index
    %c0_4 = arith.constant 0 : index
    %3 = vector.load %arg4[%c0_3, %c0_4] : memref<1x128xf32, #tpu.memory_space<vmem>>, vector<1x128xf32>
    %4 = vector.broadcast %3 : vector<1x128xf32> to vector<8x128xf32>
    %5 = arith.addf %2, %4 : vector<8x128xf32>
    %c0_5 = arith.constant 0 : index
    %c0_6 = arith.constant 0 : index
    %6 = vector.load %arg5[%c0_5, %c0_6] : memref<8x128xf32, #tpu.memory_space<vmem>>, vector<8x128xf32>
    tpu.vector_store %arg5[%c0_5, %c0_6], %5 {strides = array<i32>} : memref<8x128xf32, #tpu.memory_space<vmem>>, vector<8x128xf32>,
    return
  }
  func.func @transform_0(%arg0: i32, %arg1: i32) -> (i32, i32) {
    %c0_i32 = arith.constant 0 : i32
    %c0_i32_0 = arith.constant 0 : i32
    return %arg0, %c0_i32 : i32, i32
  }
  func.func @transform_1(%arg0: i32, %arg1: i32) -> (i32, i32) {
    %c0_i32 = arith.constant 0 : i32
    %c0_i32_0 = arith.constant 0 : i32
    return %c0_i32, %arg1 : i32, i32
  }
  func.func @transform_2(%arg0: i32, %arg1: i32) -> (i32, i32) {
    %c0_i32 = arith.constant 0 : i32
    %c0_i32_0 = arith.constant 0 : i32
    return %c0_i32, %arg1 : i32, i32
  }
  func.func @transform_3(%arg0: i32, %arg1: i32) -> (i32, i32) {
    %c0_i32 = arith.constant 0 : i32
    return %arg0, %arg1 : i32, i32
  }
}

</mosaic_0001>

<bundles_post_ra>
// kernel: _linear_forward_impl.1
= control target key start
LH: loop header
LB: loop body
LE: loop exit
PB: predicated region body
PF: predicated region fallthrough
CT: control target
= control target key end

     0   :  { %8 = vsyncpa [#allocation3], 0  ;;  %s183_s0 = inlined_call_operand.vmem [shape: f32[8,128], index: 0, kind: input, shape index: {}]   ;;  %s184_s1 = inlined_call_operand.hbm [shape: f32[128,128], index: 1, kind: input, shape index: {}]   ;;  %s185_s2 = inlined_call_operand.vmem [shape: f32[1,128], index: 2, kind: input, shape index: {}]   ;;  %s186_s3 = inlined_call_operand.hbm [shape: f32[8,128], index: 3, kind: output, shape index: {}]  }
   0x1   :  { %9 = vsyncpa [#allocation4], 0  ;;  %s16_s14 = sshll.u32 %s184_s1, 4  ;;  %s147_s15 = smov [#allocation2]   ;;  %s17_s14 = int_to_ptr.hbm [resolvable:$true] %s16_s14 }
   0x2   :  { %s18_s16 = sshll.u32 %s147_s15, 4  ;;  %s148_s17 = smov 128   ;;  %s19_s16 = int_to_ptr.vmem [resolvable:$true] %s18_s16 }
   0x3   :  { %s149_s18 = smov 8  }
   0x4   :  { %24 = dma.hbm_to_vmem [thread:$0]  %s17_s14, 2048, %s19_s16, [#allocation3], %s148_s17, %s148_s17, %s149_s18  }
   0x5   :  { %143 = dma.done.wait [#allocation3], 2048  }
   0x6   :  { %144 = vsyncadd [#allocation3], 4294965248  ;;  %v47_v0 = vld [vmem:[#allocation2 + $0x78] sm:$0xff]  ;;  %v46_v1 = vld [vmem:[#allocation2 + $0x70] sm:$0xff]  ;;  %s150_s22 = smov [#allocation5]   ;;  %s80_s26 = sshll.u32 %s186_s3, 4  ;;  %s81_s26 = int_to_ptr.hbm [resolvable:$true] %s80_s26 }
   0x7   :  { %52 = vmatpush.msra.mxu0 %v47_v0  ;;  %v45_v2 = vld [vmem:[#allocation2 + $0x68] sm:$0xff]  ;;  %v44_v3 = vld [vmem:[#allocation2 + $0x60] sm:$0xff]  ;;  %v43_v4 = vld [vmem:[#allocation2 + $0x58] sm:$0xff]  ;;  %s78_s23 = sshll.u32 %s150_s22, 4  ;;  %s79_s23 = int_to_ptr.vmem [resolvable:$true] %s78_s23 }
   0x8   :  { %v42_v5 = vld [vmem:[#allocation2 + $0x50] sm:$0xff]  ;;  %v41_v6 = vld [vmem:[#allocation2 + $0x48] sm:$0xff]  ;;  %v40_v7 = vld [vmem:[#allocation2 + $0x40] sm:$0xff] }
   0x9   :  { %53 = vmatpush.msra.mxu0 %v46_v1  ;;  %v39_v8 = vld [vmem:[#allocation2 + $0x38] sm:$0xff]  ;;  %v38_v9 = vld [vmem:[#allocation2 + $0x30] sm:$0xff]  ;;  %v37_v10 = vld [vmem:[#allocation2 + $0x28] sm:$0xff] }
   0xa   :  { %v36_v11 = vld [vmem:[#allocation2 + $0x20] sm:$0xff]  ;;  %v35_v12 = vld [vmem:[#allocation2 + $0x18] sm:$0xff]  ;;  %v34_v13 = vld [vmem:[#allocation2 + $0x10] sm:$0xff] }
   0xb   :  { %54 = vmatpush.msra.mxu0 %v45_v2  ;;  %v33_v14 = vld [vmem:[#allocation2 + $0x8] sm:$0xff]  ;;  %v32_v15 = vld [vmem:[#allocation2] sm:$0xff] }
   0xc   :  { %v31_v16 = vld [vmem:[%s183_s0] sm:$0xff] }
   0xd   :  { %55 = vmatpush.msra.mxu0 %v44_v3  ;;  %v94_v17 = vld [vmem:[%s185_s2] ss:$0 sm:$0xff] }
   0xf   :  { %56 = vmatpush.msra.mxu0 %v43_v4 }
  0x11   :  { %57 = vmatpush.msra.mxu0 %v42_v5 }
  0x13   :  { %58 = vmatpush.msra.mxu0 %v41_v6 }
  0x15   :  { %59 = vmatpush.msra.mxu0 %v40_v7 }
  0x17   :  { %60 = vmatpush.msra.mxu0 %v39_v8 }
  0x19   :  { %61 = vmatpush.msra.mxu0 %v38_v9 }
  0x1b   :  { %62 = vmatpush.msra.mxu0 %v37_v10 }
  0x1d   :  { %63 = vmatpush.msra.mxu0 %v36_v11 }
  0x1f   :  { %64 = vmatpush.msra.mxu0 %v35_v12 }
  0x21   :  { %65 = vmatpush.msra.mxu0 %v34_v13 }
  0x23   :  { %66 = vmatpush.msra.mxu0 %v33_v14 }
  0x25   :  { %67 = vmatpush.msra.mxu0 %v32_v15 }
  0x26   :  { %68 = vmatmul.f32.vlgmr.msra.gmra.mxu0 %v31_v16 }
  0xa3   :  { %v69_v18 = vpop.f32.mrf.mxu0 }
  0xa4   :  { %v70_v19 = vadd.f32 %v94_v17, %v69_v18 }
  0xa6   :  { %72 = vst [vmem:[#allocation5] sm:$0xff] %v70_v19 }
  0xa7   :  { %83 = dma.vmem_to_hbm [thread:$0]  %s79_s23, 128, %s81_s26, [#allocation4]  }
  0xa8   :  { %145 = dma.done.wait [#allocation4], 128  }
  0xa9   :  { %146 = vsyncadd [#allocation4], 4294967168 }
  0xaa   :  { %88 = vsyncpa [#allocation3], 1 }
  0xab   :  { %89 = vsyncpa [#allocation4], 1 }

</bundles_post_ra>
